<compile_context>
chip_gen: v5e
topology: v5e:2x2
jax: 0.10.0
libtpu: 0.0.40
codegen_flags: <defaults>
</compile_context>

<pallas_src>
import jax
import jax.numpy as jnp
from jax.experimental import pallas as pl
from jax.experimental.pallas import tpu as pltpu

# ---------------------------------------------------------------------------
# Problem sizes (small, consistent with the module's __init__ signature)
# ---------------------------------------------------------------------------
BATCH = 2
OBS_DIM = 16
LATENT_DIM = 32
ACTION_DIM = 8
HIDDEN = 256
K_GOALS = 5          # sample_goals(k=5); goal prior is deterministic -> identical goals
ROLLOUT_STEPS = 3    # rollout(steps=3)


# ---------------------------------------------------------------------------
# Pallas kernel: full forward hot path, single invocation (no grid)
# ---------------------------------------------------------------------------
def unified_agent_kernel(
    x_ref,
    # encoder (JEPAEncoder)
    ew1_ref, eb1_ref, ew2_ref, eb2_ref,
    # goal prior (GoalPrior)
    gw1_ref, gb1_ref, gw2_ref, gb2_ref,
    # latent dynamics (LatentDynamics): Linear(latent+action, 256) kept merged
    dw1_ref, db1_ref, dw2_ref, db2_ref,
    # policy head (see TODO below)
    pw_ref, pb_ref,
    # output
    out_ref,
):
    f32 = jnp.float32

    # Hoist every ref read once; close over arrays (not refs) below.
    x = x_ref[...].astype(f32)
    ew1, eb1 = ew1_ref[...], eb1_ref[...]
    ew2, eb2 = ew2_ref[...], eb2_ref[...]
    gw1, gb1 = gw1_ref[...], gb1_ref[...]
    gw2, gb2 = gw2_ref[...], gb2_ref[...]
    dw1, db1 = dw1_ref[...], db1_ref[...]
    dw2, db2 = dw2_ref[...], db2_ref[...]
    pw, pb = pw_ref[...], pb_ref[...]

    def linear(h, w, b):
        return jnp.dot(h, w, preferred_element_type=f32) + b

    # --- encode: z_t = encoder(x_t) ----------------------------------------
    z_t = linear(jnp.maximum(linear(x, ew1, eb1), 0.0), ew2, eb2)

    # --- sample_goals: p_beta(g | z_t) is a deterministic MLP, so the k=5
    #     goals are all identical -> compute the goal once and the k-loop in
    #     active_inference_plan collapses to a single candidate. -------------
    goal = linear(jnp.maximum(linear(z_t, gw1, gb1), 0.0), gw2, gb2)

    # TODO(synk): self.policy is not defined in the reference module;
    # implemented as a deterministic linear map on [z | goal] -> action.
    def policy(z, g):
        return linear(jnp.concatenate([z, g], axis=-1), pw, pb)

    # LatentDynamics: cat([z, a], -1) @ W1 with a single merged (40, 256) weight.
    def dynamics(z, a):
        h = jnp.maximum(linear(jnp.concatenate([z, a], axis=-1), dw1, db1), 0.0)
        return linear(h, dw2, db2)

    # TODO(synk): EnergyFunction is not defined in the reference module;
    # implemented as the mean squared distance E(z, g) = mean((z - g)^2).
    def energy(z, g):
        d = z - g
        return jnp.sum(d * d) * (1.0 / f32(d.shape[0] * d.shape[1]))

    # --- active_inference_plan with a single (deduplicated) candidate goal ---
    # rollout (unrolled, 3 steps)
    z = z_t
    traj_z, traj_a = [], []
    for _ in range(ROLLOUT_STEPS):
        a = policy(z, goal)
        z = dynamics(z, a)
        traj_z.append(z)
        traj_a.append(a)

    energies = [energy(zz, goal) for zz in traj_z]

    # fake_goal_masking: monotone energy descent along the trajectory
    descending = energies[1] <= energies[0]
    for i in range(2, ROLLOUT_STEPS):
        descending = jnp.logical_and(descending, energies[i] <= energies[i - 1])

    total_e = energies[0]
    for i in range(1, ROLLOUT_STEPS):
        total_e = total_e + energies[i]

    # argmin over the (identical) goals: accept iff masking passes and the
    # energy beats the +inf initial value (also rejects NaN energies).
    take = jnp.logical_and(descending, total_e < f32(jnp.inf))

    # TODO(synk): PyTorch forward returns None when no trajectory passes
    # fake_goal_masking; here we return zeros in that case instead.
    best_action = jnp.where(take, traj_a[0], jnp.zeros_like(traj_a[0]))
    out_ref[...] = best_action.astype(out_ref.dtype)


# ---------------------------------------------------------------------------
# Wrapper: no grid, no pipelining — whole working set (~0.25 MiB) lives in VMEM
# ---------------------------------------------------------------------------
def unified_agent_forward(x, params):
    inputs = [x] + list(params)
    vmem_spec = pl.BlockSpec(memory_space=pltpu.MemorySpace.VMEM)
    return pl.pallas_call(
        unified_agent_kernel,
        out_shape=jax.ShapeDtypeStruct((x.shape[0], ACTION_DIM), jnp.float32),
        in_specs=[vmem_spec] * len(inputs),
        out_specs=vmem_spec,
    )(*inputs)


# ---------------------------------------------------------------------------
# Deterministic parameter init (PyTorch-Linear-style uniform bounds)
# ---------------------------------------------------------------------------
def _linear_params(key, fan_in, fan_out):
    kw, kb = jax.random.split(key)
    bound = 1.0 / jnp.sqrt(jnp.float32(fan_in))
    w = jax.random.uniform(kw, (fan_in, fan_out), jnp.float32, -bound, bound)
    b = jax.random.uniform(kb, (1, fan_out), jnp.float32, -bound, bound)
    return w, b


def make_params(key):
    keys = jax.random.split(key, 7)
    # encoder
    ew1, eb1 = _linear_params(keys[0], OBS_DIM, HIDDEN)
    ew2, eb2 = _linear_params(keys[1], HIDDEN, LATENT_DIM)
    # goal prior
    gw1, gb1 = _linear_params(keys[2], LATENT_DIM, HIDDEN)
    gw2, gb2 = _linear_params(keys[3], HIDDEN, LATENT_DIM)
    # dynamics: Linear(latent+action, 256) kept as one merged weight
    dw1, db1 = _linear_params(keys[4], LATENT_DIM + ACTION_DIM, HIDDEN)
    dw2, db2 = _linear_params(keys[5], HIDDEN, LATENT_DIM)
    # policy head (synthetic; see TODO in kernel): Linear(2*latent, action)
    pw, pb = _linear_params(keys[6], 2 * LATENT_DIM, ACTION_DIM)
    return [ew1, eb1, ew2, eb2,
            gw1, gb1, gw2, gb2,
            dw1, db1, dw2, db2,
            pw, pb]


if __name__ == "__main__":
    key = jax.random.PRNGKey(0)
    k_x, k_p = jax.random.split(key)
    x = jax.random.normal(k_x, (BATCH, OBS_DIM), jnp.float32)
    params = make_params(k_p)

    out = unified_agent_forward(x, params)
    jax.block_until_ready(out)
    assert out.shape == (BATCH, ACTION_DIM)
    print("KERNEL_OK")
</pallas_src>

<mosaic_0001>
module attributes {stable_mosaic.version = 11 : i64} {
  func.func @unified_agent_kernel(%arg0: memref<2x16xf32, #tpu.memory_space<vmem>>, %arg1: memref<16x256xf32, #tpu.memory_space<vmem>>, %arg2: memref<1x256xf32, #tpu.memory_space<vmem>>, %arg3: memref<256x32xf32, #tpu.memory_space<vmem>>, %arg4: memref<1x32xf32, #tpu.memory_space<vmem>>, %arg5: memref<32x256xf32, #tpu.memory_space<vmem>>, %arg6: memref<1x256xf32, #tpu.memory_space<vmem>>, %arg7: memref<256x32xf32, #tpu.memory_space<vmem>>, %arg8: memref<1x32xf32, #tpu.memory_space<vmem>>, %arg9: memref<40x256xf32, #tpu.memory_space<vmem>>, %arg10: memref<1x256xf32, #tpu.memory_space<vmem>>, %arg11: memref<256x32xf32, #tpu.memory_space<vmem>>, %arg12: memref<1x32xf32, #tpu.memory_space<vmem>>, %arg13: memref<64x8xf32, #tpu.memory_space<vmem>>, %arg14: memref<1x8xf32, #tpu.memory_space<vmem>>, %arg15: memref<2x8xf32, #tpu.memory_space<vmem>>) attributes {dimension_semantics = [], scalar_prefetch = 0 : i64, scratch_operands = 0 : i64, tpu.core_type = #tpu.core_type<tc>} {
    %c0 = arith.constant 0 : index
    %c0_0 = arith.constant 0 : index
    %0 = vector.load %arg0[%c0, %c0_0] : memref<2x16xf32, #tpu.memory_space<vmem>>, vector<2x16xf32>
    %c0_1 = arith.constant 0 : index
    %c0_2 = arith.constant 0 : index
    %1 = vector.load %arg1[%c0_1, %c0_2] : memref<16x256xf32, #tpu.memory_space<vmem>>, vector<16x256xf32>
    %c0_3 = arith.constant 0 : index
    %c0_4 = arith.constant 0 : index
    %2 = vector.load %arg2[%c0_3, %c0_4] : memref<1x256xf32, #tpu.memory_space<vmem>>, vector<1x256xf32>
    %c0_5 = arith.constant 0 : index
    %c0_6 = arith.constant 0 : index
    %3 = vector.load %arg3[%c0_5, %c0_6] : memref<256x32xf32, #tpu.memory_space<vmem>>, vector<256x32xf32>
    %c0_7 = arith.constant 0 : index
    %c0_8 = arith.constant 0 : index
    %4 = vector.load %arg4[%c0_7, %c0_8] : memref<1x32xf32, #tpu.memory_space<vmem>>, vector<1x32xf32>
    %c0_9 = arith.constant 0 : index
    %c0_10 = arith.constant 0 : index
    %5 = vector.load %arg5[%c0_9, %c0_10] : memref<32x256xf32, #tpu.memory_space<vmem>>, vector<32x256xf32>
    %c0_11 = arith.constant 0 : index
    %c0_12 = arith.constant 0 : index
    %6 = vector.load %arg6[%c0_11, %c0_12] : memref<1x256xf32, #tpu.memory_space<vmem>>, vector<1x256xf32>
    %c0_13 = arith.constant 0 : index
    %c0_14 = arith.constant 0 : index
    %7 = vector.load %arg7[%c0_13, %c0_14] : memref<256x32xf32, #tpu.memory_space<vmem>>, vector<256x32xf32>
    %c0_15 = arith.constant 0 : index
    %c0_16 = arith.constant 0 : index
    %8 = vector.load %arg8[%c0_15, %c0_16] : memref<1x32xf32, #tpu.memory_space<vmem>>, vector<1x32xf32>
    %c0_17 = arith.constant 0 : index
    %c0_18 = arith.constant 0 : index
    %9 = vector.load %arg9[%c0_17, %c0_18] : memref<40x256xf32, #tpu.memory_space<vmem>>, vector<40x256xf32>
    %c0_19 = arith.constant 0 : index
    %c0_20 = arith.constant 0 : index
    %10 = vector.load %arg10[%c0_19, %c0_20] : memref<1x256xf32, #tpu.memory_space<vmem>>, vector<1x256xf32>
    %c0_21 = arith.constant 0 : index
    %c0_22 = arith.constant 0 : index
    %11 = vector.load %arg11[%c0_21, %c0_22] : memref<256x32xf32, #tpu.memory_space<vmem>>, vector<256x32xf32>
    %c0_23 = arith.constant 0 : index
    %c0_24 = arith.constant 0 : index
    %12 = vector.load %arg12[%c0_23, %c0_24] : memref<1x32xf32, #tpu.memory_space<vmem>>, vector<1x32xf32>
    %c0_25 = arith.constant 0 : index
    %c0_26 = arith.constant 0 : index
    %13 = vector.load %arg13[%c0_25, %c0_26] : memref<64x8xf32, #tpu.memory_space<vmem>>, vector<64x8xf32>
    %c0_27 = arith.constant 0 : index
    %c0_28 = arith.constant 0 : index
    %14 = vector.load %arg14[%c0_27, %c0_28] : memref<1x8xf32, #tpu.memory_space<vmem>>, vector<1x8xf32>
    %cst = arith.constant dense<0.000000e+00> : vector<2x256xf32>
    %15 = tpu.matmul %0, %1, %cst {dimension_numbers = #tpu.dot_dimension_numbers<[1], [0], [0], [1], [0, 0, 1, 1], [], []>} : vector<2x16xf32>, vector<16x256xf32>, vector<2x256xf32> -> vector<2x256xf32>
    %16 = vector.broadcast %2 : vector<1x256xf32> to vector<2x256xf32>
    %17 = arith.addf %15, %16 : vector<2x256xf32>
    %cst_29 = arith.constant 0.000000e+00 : f32
    %18 = vector.broadcast %cst_29 : f32 to vector<2x256xf32>
    %19 = arith.maximumf %17, %18 : vector<2x256xf32>
    %cst_30 = arith.constant dense<0.000000e+00> : vector<2x32xf32>
    %20 = tpu.matmul %19, %3, %cst_30 {dimension_numbers = #tpu.dot_dimension_numbers<[1], [0], [0], [1], [0, 0, 1, 1], [], []>} : vector<2x256xf32>, vector<256x32xf32>, vector<2x32xf32> -> vector<2x32xf32>
    %21 = vector.broadcast %4 : vector<1x32xf32> to vector<2x32xf32>
    %22 = arith.addf %20, %21 : vector<2x32xf32>
    %cst_31 = arith.constant dense<0.000000e+00> : vector<2x256xf32>
    %23 = tpu.matmul %22, %5, %cst_31 {dimension_numbers = #tpu.dot_dimension_numbers<[1], [0], [0], [1], [0, 0, 1, 1], [], []>} : vector<2x32xf32>, vector<32x256xf32>, vector<2x256xf32> -> vector<2x256xf32>
    %24 = vector.broadcast %6 : vector<1x256xf32> to vector<2x256xf32>
    %25 = arith.addf %23, %24 : vector<2x256xf32>
    %cst_32 = arith.constant 0.000000e+00 : f32
    %26 = vector.broadcast %cst_32 : f32 to vector<2x256xf32>
    %27 = arith.maximumf %25, %26 : vector<2x256xf32>
    %cst_33 = arith.constant dense<0.000000e+00> : vector<2x32xf32>
    %28 = tpu.matmul %27, %7, %cst_33 {dimension_numbers = #tpu.dot_dimension_numbers<[1], [0], [0], [1], [0, 0, 1, 1], [], []>} : vector<2x256xf32>, vector<256x32xf32>, vector<2x32xf32> -> vector<2x32xf32>
    %29 = vector.broadcast %8 : vector<1x32xf32> to vector<2x32xf32>
    %30 = arith.addf %28, %29 : vector<2x32xf32>
    %31 = tpu.concatenate %22, %30 in 1 : vector<2x32xf32>, vector<2x32xf32> -> vector<2x64xf32>
    %cst_34 = arith.constant dense<0.000000e+00> : vector<2x8xf32>
    %32 = tpu.matmul %31, %13, %cst_34 {dimension_numbers = #tpu.dot_dimension_numbers<[1], [0], [0], [1], [0, 0, 1, 1], [], []>} : vector<2x64xf32>, vector<64x8xf32>, vector<2x8xf32> -> vector<2x8xf32>
    %33 = vector.broadcast %14 : vector<1x8xf32> to vector<2x8xf32>
    %34 = arith.addf %32, %33 : vector<2x8xf32>
    %35 = tpu.concatenate %22, %34 in 1 : vector<2x32xf32>, vector<2x8xf32> -> vector<2x40xf32>
    %cst_35 = arith.constant dense<0.000000e+00> : vector<2x256xf32>
    %36 = tpu.matmul %35, %9, %cst_35 {dimension_numbers = #tpu.dot_dimension_numbers<[1], [0], [0], [1], [0, 0, 1, 1], [], []>} : vector<2x40xf32>, vector<40x256xf32>, vector<2x256xf32> -> vector<2x256xf32>
    %37 = vector.broadcast %10 : vector<1x256xf32> to vector<2x256xf32>
    %38 = arith.addf %36, %37 : vector<2x256xf32>
    %cst_36 = arith.constant 0.000000e+00 : f32
    %39 = vector.broadcast %cst_36 : f32 to vector<2x256xf32>
    %40 = arith.maximumf %38, %39 : vector<2x256xf32>
    %cst_37 = arith.constant dense<0.000000e+00> : vector<2x32xf32>
    %41 = tpu.matmul %40, %11, %cst_37 {dimension_numbers = #tpu.dot_dimension_numbers<[1], [0], [0], [1], [0, 0, 1, 1], [], []>} : vector<2x256xf32>, vector<256x32xf32>, vector<2x32xf32> -> vector<2x32xf32>
    %42 = vector.broadcast %12 : vector<1x32xf32> to vector<2x32xf32>
    %43 = arith.addf %41, %42 : vector<2x32xf32>
    %44 = tpu.concatenate %43, %30 in 1 : vector<2x32xf32>, vector<2x32xf32> -> vector<2x64xf32>
    %cst_38 = arith.constant dense<0.000000e+00> : vector<2x8xf32>
    %45 = tpu.matmul %44, %13, %cst_38 {dimension_numbers = #tpu.dot_dimension_numbers<[1], [0], [0], [1], [0, 0, 1, 1], [], []>} : vector<2x64xf32>, vector<64x8xf32>, vector<2x8xf32> -> vector<2x8xf32>
    %46 = vector.broadcast %14 : vector<1x8xf32> to vector<2x8xf32>
    %47 = arith.addf %45, %46 : vector<2x8xf32>
    %48 = tpu.concatenate %43, %47 in 1 : vector<2x32xf32>, vector<2x8xf32> -> vector<2x40xf32>
    %cst_39 = arith.constant dense<0.000000e+00> : vector<2x256xf32>
    %49 = tpu.matmul %48, %9, %cst_39 {dimension_numbers = #tpu.dot_dimension_numbers<[1], [0], [0], [1], [0, 0, 1, 1], [], []>} : vector<2x40xf32>, vector<40x256xf32>, vector<2x256xf32> -> vector<2x256xf32>
    %50 = vector.broadcast %10 : vector<1x256xf32> to vector<2x256xf32>
    %51 = arith.addf %49, %50 : vector<2x256xf32>
    %cst_40 = arith.constant 0.000000e+00 : f32
    %52 = vector.broadcast %cst_40 : f32 to vector<2x256xf32>
    %53 = arith.maximumf %51, %52 : vector<2x256xf32>
    %cst_41 = arith.constant dense<0.000000e+00> : vector<2x32xf32>
    %54 = tpu.matmul %53, %11, %cst_41 {dimension_numbers = #tpu.dot_dimension_numbers<[1], [0], [0], [1], [0, 0, 1, 1], [], []>} : vector<2x256xf32>, vector<256x32xf32>, vector<2x32xf32> -> vector<2x32xf32>
    %55 = vector.broadcast %12 : vector<1x32xf32> to vector<2x32xf32>
    %56 = arith.addf %54, %55 : vector<2x32xf32>
    %57 = tpu.concatenate %56, %30 in 1 : vector<2x32xf32>, vector<2x32xf32> -> vector<2x64xf32>
    %cst_42 = arith.constant dense<0.000000e+00> : vector<2x8xf32>
    %58 = tpu.matmul %57, %13, %cst_42 {dimension_numbers = #tpu.dot_dimension_numbers<[1], [0], [0], [1], [0, 0, 1, 1], [], []>} : vector<2x64xf32>, vector<64x8xf32>, vector<2x8xf32> -> vector<2x8xf32>
    %59 = vector.broadcast %14 : vector<1x8xf32> to vector<2x8xf32>
    %60 = arith.addf %58, %59 : vector<2x8xf32>
    %61 = tpu.concatenate %56, %60 in 1 : vector<2x32xf32>, vector<2x8xf32> -> vector<2x40xf32>
    %cst_43 = arith.constant dense<0.000000e+00> : vector<2x256xf32>
    %62 = tpu.matmul %61, %9, %cst_43 {dimension_numbers = #tpu.dot_dimension_numbers<[1], [0], [0], [1], [0, 0, 1, 1], [], []>} : vector<2x40xf32>, vector<40x256xf32>, vector<2x256xf32> -> vector<2x256xf32>
    %63 = vector.broadcast %10 : vector<1x256xf32> to vector<2x256xf32>
    %64 = arith.addf %62, %63 : vector<2x256xf32>
    %cst_44 = arith.constant 0.000000e+00 : f32
    %65 = vector.broadcast %cst_44 : f32 to vector<2x256xf32>
    %66 = arith.maximumf %64, %65 : vector<2x256xf32>
    %cst_45 = arith.constant dense<0.000000e+00> : vector<2x32xf32>
    %67 = tpu.matmul %66, %11, %cst_45 {dimension_numbers = #tpu.dot_dimension_numbers<[1], [0], [0], [1], [0, 0, 1, 1], [], []>} : vector<2x256xf32>, vector<256x32xf32>, vector<2x32xf32> -> vector<2x32xf32>
    %68 = vector.broadcast %12 : vector<1x32xf32> to vector<2x32xf32>
    %69 = arith.addf %67, %68 : vector<2x32xf32>
    %70 = arith.subf %43, %30 : vector<2x32xf32>
    %71 = arith.mulf %70, %70 : vector<2x32xf32>
    %72 = vector.shape_cast %71 : vector<2x32xf32> to vector<1x2x32xf32>
    %cst_46 = arith.constant dense<0.000000e+00> : vector<1xf32>
    %73 = vector.multi_reduction <add>, %72, %cst_46 [1, 2] : vector<1x2x32xf32> to vector<1xf32>
    %74 = vector.shape_cast %73 : vector<1xf32> to vector<1x1x1xf32>
    %75 = vector.extract %74[0, 0, 0] : f32 from vector<1x1x1xf32>
    %cst_47 = arith.constant 1.000000e+00 : f32
    %cst_48 = arith.constant 6.400000e+01 : f32
    %76 = arith.divf %cst_47, %cst_48 : f32
    %77 = arith.mulf %75, %76 : f32
    %78 = arith.subf %56, %30 : vector<2x32xf32>
    %79 = arith.mulf %78, %78 : vector<2x32xf32>
    %80 = vector.shape_cast %79 : vector<2x32xf32> to vector<1x2x32xf32>
    %cst_49 = arith.constant dense<0.000000e+00> : vector<1xf32>
    %81 = vector.multi_reduction <add>, %80, %cst_49 [1, 2] : vector<1x2x32xf32> to vector<1xf32>
    %82 = vector.shape_cast %81 : vector<1xf32> to vector<1x1x1xf32>
    %83 = vector.extract %82[0, 0, 0] : f32 from vector<1x1x1xf32>
    %cst_50 = arith.constant 1.000000e+00 : f32
    %cst_51 = arith.constant 6.400000e+01 : f32
    %84 = arith.divf %cst_50, %cst_51 : f32
    %85 = arith.mulf %83, %84 : f32
    %86 = arith.subf %69, %30 : vector<2x32xf32>
    %87 = arith.mulf %86, %86 : vector<2x32xf32>
    %88 = vector.shape_cast %87 : vector<2x32xf32> to vector<1x2x32xf32>
    %cst_52 = arith.constant dense<0.000000e+00> : vector<1xf32>
    %89 = vector.multi_reduction <add>, %88, %cst_52 [1, 2] : vector<1x2x32xf32> to vector<1xf32>
    %90 = vector.shape_cast %89 : vector<1xf32> to vector<1x1x1xf32>
    %91 = vector.extract %90[0, 0, 0] : f32 from vector<1x1x1xf32>
    %cst_53 = arith.constant 1.000000e+00 : f32
    %cst_54 = arith.constant 6.400000e+01 : f32
    %92 = arith.divf %cst_53, %cst_54 : f32
    %93 = arith.mulf %91, %92 : f32
    %94 = arith.cmpf ole, %85, %77 : f32
    %95 = arith.cmpf ole, %93, %85 : f32
    %96 = arith.andi %94, %95 : i1
    %97 = arith.addf %77, %85 : f32
    %98 = arith.addf %97, %93 : f32
    %cst_55 = arith.constant 0x7F800000 : f32
    %99 = arith.cmpf olt, %98, %cst_55 : f32
    %100 = arith.andi %96, %99 : i1
    %cst_56 = arith.constant 0.000000e+00 : f32
    %101 = vector.broadcast %cst_56 : f32 to vector<2x8xf32>
    %102 = arith.select %100, %34, %101 : vector<2x8xf32>
    %c0_57 = arith.constant 0 : index
    %c0_58 = arith.constant 0 : index
    %103 = vector.load %arg15[%c0_57, %c0_58] : memref<2x8xf32, #tpu.memory_space<vmem>>, vector<2x8xf32>
    tpu.vector_store %arg15[%c0_57, %c0_58], %102 {strides = array<i32>} : memref<2x8xf32, #tpu.memory_space<vmem>>, vector<2x8xf32>,
    return
  }
}

</mosaic_0001>

<bundles_post_ra>
// kernel: tpu_custom_call.1
= control target key start
LH: loop header
LB: loop body
LE: loop exit
PB: predicated region body
PF: predicated region fallthrough
CT: control target
= control target key end

     0   :  { %vm190_vm0 = vcmask 130048   ;;  %s1657_s0 = inlined_call_operand.vmem [shape: f32[2,16], index: 0, kind: input, shape index: {}]   ;;  %s1658_s1 = inlined_call_operand.vmem [shape: f32[16,256], index: 1, kind: input, shape index: {}]   ;;  %s1659_s2 = inlined_call_operand.vmem [shape: f32[1,256], index: 2, kind: input, shape index: {}]   ;;  %s1660_s3 = inlined_call_operand.vmem [shape: f32[256,32], index: 3, kind: input, shape index: {}]   ;;  %s1661_s4 = inlined_call_operand.vmem [shape: f32[1,32], index: 4, kind: input, shape index: {}]   ;;  %s1662_s5 = inlined_call_operand.vmem [shape: f32[32,256], index: 5, kind: input, shape index: {}]   ;;  %s1663_s6 = inlined_call_operand.vmem [shape: f32[1,256], index: 6, kind: input, shape index: {}]   ;;  %s1664_s7 = inlined_call_operand.vmem [shape: f32[256,32], index: 7, kind: input, shape index: {}]   ;;  %s1665_s8 = inlined_call_operand.vmem [shape: f32[1,32], index: 8, kind: input, shape index: {}]   ;;  %s1666_s9 = inlined_call_operand.vmem [shape: f32[40,256], index: 9, kind: input, shape index: {}]   ;;  %s1667_s10 = inlined_call_operand.vmem [shape: f32[1,256], index: 10, kind: input, shape index: {}]   ;;  %s1668_s11 = inlined_call_operand.vmem [shape: f32[256,32], index: 11, kind: input, shape index: {}]   ;;  %s1669_s12 = inlined_call_operand.vmem [shape: f32[1,32], index: 12, kind: input, shape index: {}]   ;;  %s1670_s13 = inlined_call_operand.vmem [shape: f32[64,8], index: 13, kind: input, shape index: {}]   ;;  %s1671_s14 = inlined_call_operand.vmem [shape: f32[1,8], index: 14, kind: input, shape index: {}]   ;;  %s1672_s15 = inlined_call_operand.hbm [shape: f32[2,8], index: 15, kind: output, shape index: {}]  }
   0x1   :  { %v55_v0 = vld [vmem:[%s1658_s1 + $0x18] sm:$0xff]  ;;  %v53_v1 = vld [vmem:[%s1658_s1 + $0x8] sm:$0xff]  ;;  %v51_v2 = vld [vmem:[%s1657_s0] sm:$0x3] }
   0x2   :  { %228 = vmatpush.msra.mxu2 %v55_v0  ;;  %v54_v3 = vld [vmem:[%s1658_s1 + $0x10] sm:$0xff]  ;;  %v52_v4 = vld [vmem:[%s1658_s1] sm:$0xff]  ;;  %v72_v5 = vld [vmem:[%s1660_s3 + $0x78] sm:$0xff] }
   0x3   :  { %208 = vmatpush.msra.mxu0 %v54_v3  ;;  %v88_v6 = vld [vmem:[%s1660_s3 + $0xf8] sm:$0xff]  ;;  %v87_v7 = vld [vmem:[%s1660_s3 + $0xf0] sm:$0xff]  ;;  %v86_v9 = vld [vmem:[%s1660_s3 + $0xe8] sm:$0xff] }
   0x4   :  { %229 = vmatpush.msra.mxu2 %v53_v1  ;;  %259 = vmatpush.msra.mxu3 %v88_v6  ;;  %v71_v8 = vld [vmem:[%s1660_s3 + $0x70] sm:$0xff]  ;;  %v70_v10 = vld [vmem:[%s1660_s3 + $0x68] sm:$0xff]  ;;  %v85_v11 = vld [vmem:[%s1660_s3 + $0xe0] sm:$0xff] }
   0x5   :  { %804 = vmatmul.msk.f32.vlgmr.msra.gmra.mxu2 %vm190_vm0, %v51_v2  ;;  %209 = vmatpush.msra.mxu0 %v52_v4  ;;  %v69_v12 = vld [vmem:[%s1660_s3 + $0x60] sm:$0xff]  ;;  %v84_v13 = vld [vmem:[%s1660_s3 + $0xd8] sm:$0xff]  ;;  %v83_v15 = vld [vmem:[%s1660_s3 + $0xd0] sm:$0xff] }
   0x6   :  { %803 = vmatmul.msk.f32.vlgmr.msra.gmra.mxu0 %vm190_vm0, %v51_v2  ;;  %239 = vmatpush.msrb.mxu2 %v72_v5  ;;  %v68_v14 = vld [vmem:[%s1660_s3 + $0x58] sm:$0xff]  ;;  %v67_v16 = vld [vmem:[%s1660_s3 + $0x50] sm:$0xff] }
   0x7   :  { %260 = vmatpush.msra.mxu3 %v87_v7 }
   0x8   :  { %240 = vmatpush.msrb.mxu2 %v71_v8 }
   0x9   :  { %261 = vmatpush.msra.mxu3 %v86_v9 }
   0xa   :  { %241 = vmatpush.msrb.mxu2 %v70_v10 }
   0xb   :  { %262 = vmatpush.msra.mxu3 %v85_v11 }
   0xc   :  { %242 = vmatpush.msrb.mxu2 %v69_v12 }
   0xd   :  { %263 = vmatpush.msra.mxu3 %v84_v13 }
   0xe   :  { %20 = vsyncpa [#allocation3], 0  ;;  %243 = vmatpush.msrb.mxu2 %v68_v14  ;;  %v82_v17 = vld [vmem:[%s1660_s3 + $0xc8] sm:$0xff]  ;;  %v81_v19 = vld [vmem:[%s1660_s3 + $0xc0] sm:$0xff]  ;;  %vm284_vm1 = vcmask 261120   ;;  %s855_s23 = smov 32  }
   0xf   :  { %v66_v18 = vld [vmem:[%s1660_s3 + $0x48] sm:$0xff]  ;;  %264 = vmatpush.msra.mxu3 %v83_v15  ;;  %v65_v20 = vld [vmem:[%s1660_s3 + $0x40] sm:$0xff]  ;;  %v80_v21 = vld [vmem:[%s1660_s3 + $0xb8] sm:$0xff]  ;;  %vm381_vm2 = vcmask 523264   ;;  %vm415_vm3 = vcmask 326656   ;;  %vm734_vm4 = vcmask 254976  }
  0x10   :  { %244 = vmatpush.msrb.mxu2 %v67_v16  ;;  %v64_v22 = vld [vmem:[%s1660_s3 + $0x38] sm:$0xff]  ;;  %v79_v23 = vld [vmem:[%s1660_s3 + $0xb0] sm:$0xff]  ;;  %v78_v25 = vld [vmem:[%s1660_s3 + $0xa8] sm:$0xff]  ;;  %s794_s20 = sshll.u32 %s1672_s15, 4  ;;  %vm785_vm5 = vcmask 58368   ;;  %s795_s20 = int_to_ptr.hbm [resolvable:$true] %s794_s20 }
  0x11   :  { %265 = vmatpush.msra.mxu3 %v82_v17  ;;  %v63_v24 = vld [vmem:[%s1660_s3 + $0x30] sm:$0xff]  ;;  %v62_v26 = vld [vmem:[%s1660_s3 + $0x28] sm:$0xff]  ;;  %v77_v27 = vld [vmem:[%s1660_s3 + $0xa0] sm:$0xff] }
  0x12   :  { %245 = vmatpush.msrb.mxu2 %v66_v18  ;;  %v61_v28 = vld [vmem:[%s1660_s3 + $0x20] sm:$0xff]  ;;  %v60_v29 = vld [vmem:[%s1660_s3 + $0x18] sm:$0xff]  ;;  %v59_v30 = vld [vmem:[%s1660_s3 + $0x10] sm:$0xff] }
  0x13   :  { %266 = vmatpush.msra.mxu3 %v81_v19  ;;  %v76_v31 = vld [vmem:[%s1660_s3 + $0x98] sm:$0xff]  ;;  %v58_v32 = vld [vmem:[%s1660_s3 + $0x8] sm:$0xff]  ;;  %v75_v33 = vld [vmem:[%s1660_s3 + $0x90] sm:$0xff] }
  0x14   :  { %246 = vmatpush.msrb.mxu2 %v65_v20  ;;  %v57_v34 = vld [vmem:[%s1660_s3] sm:$0xff]  ;;  %v74_v35 = vld [vmem:[%s1660_s3 + $0x88] sm:$0xff]  ;;  %v96_v37 = vld [vmem:[%s1662_s5 + $0x30] sm:$0xff] }
  0x15   :  { %267 = vmatpush.msra.mxu3 %v80_v21  ;;  %v73_v36 = vld [vmem:[%s1660_s3 + $0x80] sm:$0xff]  ;;  %v97_v38 = vld [vmem:[%s1662_s5 + $0x38] sm:$0xff]  ;;  %v95_v49 = vld [vmem:[%s1662_s5 + $0x28] sm:$0xff] }
  0x16   :  { %247 = vmatpush.msrb.mxu2 %v64_v22  ;;  %v94_v39 = vld [vmem:[%s1662_s5 + $0x20] sm:$0xff]  ;;  %320 = vmatpush.msra.mxu1 %v97_v38  ;;  %v92_v50 = vld [vmem:[%s1662_s5 + $0x10] sm:$0xff]  ;;  %v93_v51 = vld [vmem:[%s1662_s5 + $0x18] sm:$0xff] }
  0x17   :  { %268 = vmatpush.msra.mxu3 %v79_v23  ;;  %v56_v40 = vld [vmem:[%s1659_s2] sm:$0x3]  ;;  %v91_v53 = vld [vmem:[%s1662_s5 + $0x8] sm:$0xff]  ;;  %v130_v54 = vld [vmem:[%s1664_s7 + $0xf8] sm:$0xff] }
  0x18   :  { %248 = vmatpush.msrb.mxu2 %v63_v24  ;;  %v186_v41 = vperm.slane %v56_v40, 0  ;;  %v187_v44 = vperm.slane %v56_v40, 1  ;;  %321 = vmatpush.msra.mxu1 %v95_v49  ;;  %v90_v52 = vld [vmem:[%s1662_s5] sm:$0xff]  ;;  %v129_v55 = vld [vmem:[%s1664_s7 + $0xf0] sm:$0xff]  ;;  %v114_v56 = vld [vmem:[%s1664_s7 + $0x78] sm:$0xff] }
  0x19   :  { %269 = vmatpush.msra.mxu3 %v78_v25  ;;  %v113_v57 = vld [vmem:[%s1664_s7 + $0x70] sm:$0xff]  ;;  %v128_v58 = vld [vmem:[%s1664_s7 + $0xe8] sm:$0xff]  ;;  %333 = vmatpush.msrb.mxu0 %v114_v56  ;;  %v127_v60 = vld [vmem:[%s1664_s7 + $0xe0] sm:$0xff] }
  0x1a   :  { %249 = vmatpush.msrb.mxu2 %v62_v26  ;;  %322 = vmatpush.msra.mxu1 %v93_v51  ;;  %v112_v59 = vld [vmem:[%s1664_s7 + $0x68] sm:$0xff]  ;;  %v111_v61 = vld [vmem:[%s1664_s7 + $0x60] sm:$0xff]  ;;  %v126_v62 = vld [vmem:[%s1664_s7 + $0xd8] sm:$0xff] }
  0x1b   :  { %270 = vmatpush.msra.mxu3 %v77_v27  ;;  %334 = vmatpush.msrb.mxu0 %v113_v57  ;;  %v110_v63 = vld [vmem:[%s1664_s7 + $0x58] sm:$0xff]  ;;  %v125_v0 = vld [vmem:[%s1664_s7 + $0xd0] sm:$0xff]  ;;  %v124_v2 = vld [vmem:[%s1664_s7 + $0xc8] sm:$0xff] }
  0x1c   :  { %250 = vmatpush.msrb.mxu2 %v61_v28  ;;  %323 = vmatpush.msra.mxu1 %v91_v53  ;;  %v109_v1 = vld [vmem:[%s1664_s7 + $0x50] sm:$0xff]  ;;  %v108_v3 = vld [vmem:[%s1664_s7 + $0x48] sm:$0xff]  ;;  %v123_v4 = vld [vmem:[%s1664_s7 + $0xc0] sm:$0xff] }
  0x1d   :  { %271 = vmatpush.msra.mxu3 %v76_v31  ;;  %335 = vmatpush.msrb.mxu0 %v112_v59  ;;  %v107_v5 = vld [vmem:[%s1664_s7 + $0x40] sm:$0xff]  ;;  %v122_v6 = vld [vmem:[%s1664_s7 + $0xb8] sm:$0xff]  ;;  %v121_v8 = vld [vmem:[%s1664_s7 + $0xb0] sm:$0xff] }
  0x1e   :  { %251 = vmatpush.msrb.mxu2 %v60_v29  ;;  %353 = vmatpush.msrb.mxu1 %v130_v54  ;;  %v106_v7 = vld [vmem:[%s1664_s7 + $0x38] sm:$0xff]  ;;  %v105_v9 = vld [vmem:[%s1664_s7 + $0x30] sm:$0xff]  ;;  %v120_v10 = vld [vmem:[%s1664_s7 + $0xa8] sm:$0xff] }
  0x1f   :  { %272 = vmatpush.msra.mxu3 %v75_v33  ;;  %336 = vmatpush.msrb.mxu0 %v111_v61  ;;  %v119_v11 = vld [vmem:[%s1664_s7 + $0xa0] sm:$0xff]  ;;  %v118_v13 = vld [vmem:[%s1664_s7 + $0x98] sm:$0xff]  ;;  %v104_v18 = vld [vmem:[%s1664_s7 + $0x28] sm:$0xff] }
  0x20   :  { %252 = vmatpush.msrb.mxu2 %v59_v30  ;;  %354 = vmatpush.msrb.mxu1 %v129_v55  ;;  %v825_v12 = vld [vmem:[%s1661_s4] ss:$0 sm:$0xff]  ;;  %v117_v19 = vld [vmem:[%s1664_s7 + $0x90] sm:$0xff]  ;;  %v116_v21 = vld [vmem:[%s1664_s7 + $0x88] sm:$0xff] }
  0x21   :  { %273 = vmatpush.msra.mxu3 %v74_v35  ;;  %337 = vmatpush.msrb.mxu0 %v110_v63  ;;  %v103_v20 = vld [vmem:[%s1664_s7 + $0x20] sm:$0xff]  ;;  %v102_v22 = vld [vmem:[%s1664_s7 + $0x18] sm:$0xff]  ;;  %v101_v24 = vld [vmem:[%s1664_s7 + $0x10] sm:$0xff] }
  0x22   :  { %253 = vmatpush.msrb.mxu2 %v58_v32  ;;  %355 = vmatpush.msrb.mxu1 %v128_v58  ;;  %v115_v23 = vld [vmem:[%s1664_s7 + $0x80] sm:$0xff]  ;;  %v100_v25 = vld [vmem:[%s1664_s7 + $0x8] sm:$0xff]  ;;  %v1209_v40 = vld [vmem:[%s1670_s13 + $0x18] sm:$0xff] }
  0x23   :  { %274 = vmatpush.msra.mxu3 %v73_v36  ;;  %338 = vmatpush.msrb.mxu0 %v109_v1  ;;  %v99_v26 = vld [vmem:[%s1664_s7] sm:$0xff]  ;;  %v1186_v36 = vld [vmem:[%s1670_s13 + $0x38] sm:$0xff]  ;;  %v1197_v38 = vld [vmem:[%s1670_s13 + $0x28] sm:$0xff] }
  0x24   :  { %254 = vmatpush.msrb.mxu2 %v57_v34  ;;  %356 = vmatpush.msrb.mxu1 %v127_v60  ;;  %v98_v27 = vld [vmem:[%s1663_s6] sm:$0x3]  ;;  %v1272_v54 = vld [vmem:[%s1666_s9 + $0x10] sm:$0xff]  ;;  %v1295_v59 = vld [vmem:[%s1666_s9 + $0x48] sm:$0xff] }
  0x25   :  { %300 = vmatpush.msrb.mxu3 %v96_v37  ;;  %339 = vmatpush.msrb.mxu0 %v108_v3  ;;  %v281_v28 = vperm.slane %v98_v27, 1  ;;  %v280_v32 = vperm.slane %v98_v27, 0  ;;  %v1191_v37 = vld [vmem:[%s1670_s13 + $0x30] sm:$0xff]  ;;  %v1255_v51 = vld [vmem:[%s1666_s9 + $0x40] sm:$0xff]  ;;  %v1301_v60 = vld [vmem:[%s1666_s9 + $0x38] sm:$0xff] }
  0x26   :  { %357 = vmatpush.msrb.mxu1 %v126_v62  ;;  %393 = vmatpush.msra.mxu2 %v1186_v36  ;;  %v1266_v53 = vld [vmem:[%s1666_s9 + $0x20] sm:$0xff]  ;;  %v1306_v61 = vld [vmem:[%s1666_s9 + $0x28] sm:$0xff]  ;;  %v1312_v62 = vld [vmem:[%s1666_s9 + $0x18] sm:$0xff] }
  0x27   :  { %301 = vmatpush.msrb.mxu3 %v94_v39  ;;  %340 = vmatpush.msrb.mxu0 %v107_v5  ;;  %v1203_v39 = vld [vmem:[%s1670_s13 + $0x20] sm:$0xff]  ;;  %v1318_v63 = vld [vmem:[%s1666_s9 + $0x8] sm:$0xff]  ;;  %v1330_v1 = vld [vmem:[%s1668_s11 + $0x70] sm:$0xff] }
  0x28   :  { %358 = vmatpush.msrb.mxu1 %v125_v0  ;;  %394 = vmatpush.msra.mxu2 %v1191_v37  ;;  %v1278_v55 = vld [vmem:[%s1666_s9] sm:$0xff]  ;;  %v1325_v0 = vld [vmem:[%s1668_s11 + $0x78] sm:$0xff]  ;;  %v1342_v3 = vld [vmem:[%s1668_s11 + $0x68] sm:$0xff] }
  0x29   :  { %302 = vmatpush.msrb.mxu3 %v92_v50  ;;  %341 = vmatpush.msrb.mxu0 %v106_v7  ;;  %v1285_v56 = vld [vmem:[%s1671_s14] ss:$0 sm:$0xff]  ;;  %v1354_v5 = vld [vmem:[%s1668_s11 + $0xe8] sm:$0xff]  ;;  %s856_s14 = smov [#allocation2]  }
  0x2a   :  { %359 = vmatpush.msrb.mxu1 %v124_v2  ;;  %395 = vmatpush.msra.mxu2 %v1197_v38  ;;  %v1336_v2 = vld [vmem:[%s1668_s11 + $0xf8] sm:$0xff]  ;;  %v1367_v7 = vld [vmem:[%s1668_s11 + $0xe0] sm:$0xff]  ;;  %v1501_v27 = vld [vmem:[%s1668_s11 + $0xa8] sm:$0xff]  ;;  %s792_s2 = sshll.u32 %s856_s14, 4  ;;  %s793_s2 = int_to_ptr.vmem [resolvable:$true] %s792_s2 }
  0x2b   :  { %303 = vmatpush.msrb.mxu3 %v90_v52  ;;  %342 = vmatpush.msrb.mxu0 %v105_v9  ;;  %v1260_v52 = vld [vmem:[%s1666_s9 + $0x30] sm:$0xff]  ;;  %v1380_v9 = vld [vmem:[%s1668_s11 + $0xd8] sm:$0xff] }
  0x2c   :  { %360 = vmatpush.msrb.mxu1 %v123_v4  ;;  %396 = vmatpush.msra.mxu2 %v1203_v39  ;;  %v1348_v4 = vld [vmem:[%s1668_s11 + $0xf0] sm:$0xff] }
  0x2d   :  { %343 = vmatpush.msrb.mxu0 %v104_v18  ;;  %v1432_v18 = vld [vmem:[%s1668_s11 + $0xb8] sm:$0xff] }
  0x2e   :  { %361 = vmatpush.msrb.mxu1 %v122_v6  ;;  %397 = vmatpush.msra.mxu2 %v1209_v40  ;;  %v1360_v6 = vld [vmem:[%s1668_s11 + $0x60] sm:$0xff] }
  0x2f   :  { %344 = vmatpush.msrb.mxu0 %v103_v20  ;;  %v1446_v20 = vld [vmem:[%s1668_s11 + $0x28] sm:$0xff] }
  0x30   :  { %362 = vmatpush.msrb.mxu1 %v121_v8  ;;  %v1373_v8 = vld [vmem:[%s1668_s11 + $0x58] sm:$0xff] }
  0x31   :  { %345 = vmatpush.msrb.mxu0 %v102_v22 }
  0x32   :  { %363 = vmatpush.msrb.mxu1 %v120_v10  ;;  %v1386_v10 = vld [vmem:[%s1668_s11 + $0x50] sm:$0xff] }
  0x33   :  { %346 = vmatpush.msrb.mxu0 %v101_v24 }
  0x34   :  { %364 = vmatpush.msrb.mxu1 %v119_v11  ;;  %v1393_v11 = vld [vmem:[%s1668_s11 + $0xd0] sm:$0xff] }
  0x35   :  { %347 = vmatpush.msrb.mxu0 %v100_v25  ;;  %v1489_v25 = vld [vmem:[%s1668_s11 + $0xb0] sm:$0xff] }
  0x36   :  { %365 = vmatpush.msrb.mxu1 %v118_v13  ;;  %v1406_v13 = vld [vmem:[%s1668_s11 + $0xc8] sm:$0xff] }
  0x37   :  { %348 = vmatpush.msrb.mxu0 %v99_v26  ;;  %v1496_v26 = vld [vmem:[%s1668_s11 + $0x8] sm:$0xff] }
  0x38   :  { %366 = vmatpush.msrb.mxu1 %v117_v19  ;;  %v1438_v19 = vld [vmem:[%s1668_s11 + $0x30] sm:$0xff] }
  0x39   :  { %464 = vmatpush.msra.mxu0 %v1325_v0 }
  0x3a   :  { %367 = vmatpush.msrb.mxu1 %v116_v21  ;;  %v1454_v21 = vld [vmem:[%s1668_s11 + $0x20] sm:$0xff] }
  0x3b   :  { %465 = vmatpush.msra.mxu0 %v1330_v1 }
  0x3c   :  { %368 = vmatpush.msrb.mxu1 %v115_v23  ;;  %v1461_v23 = vld [vmem:[%s1668_s11 + $0x18] sm:$0xff] }
  0x3d   :  { %466 = vmatpush.msra.mxu0 %v1342_v3 }
  0x3f   :  { %467 = vmatpush.msra.mxu0 %v1360_v6 }
  0x41   :  { %468 = vmatpush.msra.mxu0 %v1373_v8 }
  0x43   :  { %469 = vmatpush.msra.mxu0 %v1386_v10 }
  0x83   :  { %v211_v42 = vpop.f32.mrf.mxu0 }
  0x84   :  { %v212_v43 = vadd.f32 %v211_v42, %v186_v41  ;;  %v1215_v41 = vld [vmem:[%s1670_s13 + $0x10] sm:$0xff]  ;;  %v1221_v42 = vld [vmem:[%s1670_s13 + $0x8] sm:$0xff] }
  0x85   :  { %398 = vmatpush.msra.mxu2 %v1215_v41 }
  0x86   :  { %v234_v45 = vmax.f32 %v212_v43, 0.0  ;;  %v826_v43 = vld [vmem:[%s1665_s8] ss:$0 sm:$0xff] }
  0x87   :  { %399 = vmatpush.msra.mxu2 %v1221_v42 }
  0x88   :  { %v231_v46 = vpop.f32.mrf.mxu2  ;;  %255 = vmatmul.f32.vlgmr.msrb.gmra.mxu2 %v234_v45 }
  0x89   :  { %v232_v47 = vadd.f32 %v231_v46, %v187_v44 }
  0x8b   :  { %v235_v48 = vmax.f32 %v232_v47, 0.0 }
  0x8d   :  { %275 = vmatmul.f32.vlgmr.msra.gmra.mxu3 %v235_v48  ;;  %v1235_v48 = vld [vmem:[%s1670_s13] sm:$0xff] }
  0x8e   :  { %400 = vmatpush.msra.mxu2 %v1235_v48  ;;  %430 = vmatpush.msra.mxu3 %v1255_v51 }
  0x90   :  { %516 = vmatpush.msrb.mxu2 %v1186_v36  ;;  %431 = vmatpush.msra.mxu3 %v1260_v52 }
  0x92   :  { %517 = vmatpush.msrb.mxu2 %v1191_v37  ;;  %432 = vmatpush.msra.mxu3 %v1266_v53 }
  0x94   :  { %518 = vmatpush.msrb.mxu2 %v1197_v38  ;;  %433 = vmatpush.msra.mxu3 %v1272_v54 }
  0x96   :  { %519 = vmatpush.msrb.mxu2 %v1203_v39  ;;  %434 = vmatpush.msra.mxu3 %v1278_v55 }
  0x98   :  { %520 = vmatpush.msrb.mxu2 %v1209_v40 }
  0x9a   :  { %521 = vmatpush.msrb.mxu2 %v1215_v41 }
  0x9c   :  { %522 = vmatpush.msrb.mxu2 %v1221_v42 }
  0x9e   :  { %523 = vmatpush.msrb.mxu2 %v1235_v48 }
 0x10b   :  { %v256_v14 = vpop.f32.mrf.mxu2 }
 0x10c   :  { %v257_v15 = vadd.f32 %v825_v12, %v256_v14  ;;  %v1399_v12 = vld [vmem:[%s1668_s11 + $0x48] sm:$0xff]  ;;  %v1412_v14 = vld [vmem:[%s1668_s11 + $0x40] sm:$0xff] }
 0x10d   :  { %470 = vmatpush.msra.mxu0 %v1399_v12 }
 0x10f   :  { %471 = vmatpush.msra.mxu0 %v1412_v14 }
 0x110   :  { %v276_v16 = vpop.f32.mrf.mxu3 }
 0x111   :  { %v1147_v17 = vadd.f32 %v276_v16, %v257_v15  ;;  %v1419_v15 = vld [vmem:[%s1668_s11 + $0xc0] sm:$0xff]  ;;  %v1425_v16 = vld [vmem:[%s1668_s11 + $0x38] sm:$0xff] }
 0x112   :  { %472 = vmatpush.msra.mxu0 %v1425_v16 }
 0x113   :  { %805 = vmatmul.msk.f32.vlgmr.msrb.gmra.mxu3 %vm284_vm1, %v1147_v17  ;;  %806 = vmatmul.msk.f32.vlgmr.msra.gmra.mxu1 %vm284_vm1, %v1147_v17 }
 0x114   :  { %450 = vmatpush.msrb.mxu3 %v1295_v59  ;;  %484 = vmatpush.msra.mxu1 %v1336_v2 }
 0x115   :  { %473 = vmatpush.msra.mxu0 %v1438_v19 }
 0x116   :  { %451 = vmatpush.msrb.mxu3 %v1301_v60  ;;  %485 = vmatpush.msra.mxu1 %v1348_v4 }
 0x117   :  { %474 = vmatpush.msra.mxu0 %v1446_v20 }
 0x118   :  { %452 = vmatpush.msrb.mxu3 %v1306_v61  ;;  %486 = vmatpush.msra.mxu1 %v1354_v5 }
 0x119   :  { %475 = vmatpush.msra.mxu0 %v1454_v21 }
 0x11a   :  { %453 = vmatpush.msrb.mxu3 %v1312_v62  ;;  %487 = vmatpush.msra.mxu1 %v1367_v7 }
 0x11b   :  { %476 = vmatpush.msra.mxu0 %v1461_v23 }
 0x11c   :  { %454 = vmatpush.msrb.mxu3 %v1318_v63  ;;  %488 = vmatpush.msra.mxu1 %v1380_v9 }
 0x11e   :  { %489 = vmatpush.msra.mxu1 %v1393_v11 }
 0x120   :  { %490 = vmatpush.msra.mxu1 %v1406_v13 }
 0x122   :  { %491 = vmatpush.msra.mxu1 %v1419_v15 }
 0x124   :  { %492 = vmatpush.msra.mxu1 %v1432_v18 }
 0x126   :  { %493 = vmatpush.msra.mxu1 %v1489_v25 }
 0x128   :  { %494 = vmatpush.msra.mxu1 %v1501_v27 }
 0x190   :  { %v325_v29 = vpop.f32.mrf.mxu1 }
 0x191   :  { %v326_v30 = vadd.f32 %v325_v29, %v281_v28  ;;  %v1509_v28 = vld [vmem:[%s1668_s11] sm:$0xff] }
 0x192   :  { %v1514_v29 = vld [vmem:[%s1668_s11 + $0xa0] sm:$0xff] }
 0x193   :  { %v329_v31 = vmax.f32 %v326_v30, 0.0  ;;  %495 = vmatpush.msra.mxu1 %v1514_v29  ;;  %v1522_v30 = vld [vmem:[%s1668_s11 + $0x98] sm:$0xff] }
 0x195   :  { %369 = vmatmul.f32.vlgmr.msrb.gmra.mxu1 %v329_v31  ;;  %v1530_v31 = vld [vmem:[%s1668_s11 + $0x90] sm:$0xff] }
 0x196   :  { %v305_v33 = vpop.f32.mrf.mxu3  ;;  %496 = vmatpush.msra.mxu1 %v1522_v30 }
 0x197   :  { %v306_v34 = vadd.f32 %v305_v33, %v280_v32  ;;  %v1537_v32 = vld [vmem:[%s1668_s11 + $0x88] sm:$0xff]  ;;  %v1544_v33 = vld [vmem:[%s1668_s11 + $0x80] sm:$0xff] }
 0x198   :  { %497 = vmatpush.msra.mxu1 %v1530_v31 }
 0x199   :  { %v328_v35 = vmax.f32 %v306_v34, 0.0  ;;  %v142_v34 = vld [vmem:[%s1667_s10] sm:$0x3] }
 0x19a   :  { %498 = vmatpush.msra.mxu1 %v1537_v32 }
 0x19b   :  { %349 = vmatmul.f32.vlgmr.msrb.gmra.mxu0 %v328_v35  ;;  %v1560_v35 = vperm.slane %v142_v34, 0 }
 0x19c   :  { %499 = vmatpush.msra.mxu1 %v1544_v33 }
 0x19e   :  { %681 = vmatpush.msrb.mxu1 %v1295_v59 }
 0x1a0   :  { %682 = vmatpush.msrb.mxu1 %v1301_v60 }
 0x1a2   :  { %683 = vmatpush.msrb.mxu1 %v1306_v61 }
 0x1a4   :  { %684 = vmatpush.msrb.mxu1 %v1312_v62 }
 0x1a6   :  { %685 = vmatpush.msrb.mxu1 %v1318_v63 }
 0x212   :  { %v370_v46 = vpop.f32.mrf.mxu1 }
 0x218   :  { %v350_v44 = vpop.f32.mrf.mxu0 }
 0x219   :  { %v351_v45 = vadd.f32 %v826_v43, %v350_v44  ;;  %v1601_v43 = vld [vmem:[%s1669_s12] ss:$0 sm:$0xff] }
 0x21b   :  { %v1228_v47 = vadd.f32 %v370_v46, %v351_v45 }
 0x21d   :  { %374 = vrot.lane.b32.xlu0 %v1228_v47, %s855_s23 }
 0x28f   :  { %v1246_v49 = vpop.permute.xlu0 %374 }
 0x290   :  { %v377_v50 = vsel %vm284_vm1, %v1147_v17, %v1246_v49 }
 0x291   :  { %807 = vmatmul.msk.f32.vlgmr.msra.gmra.mxu2 %vm381_vm2, %v377_v50 }
 0x292   :  { %578 = vmatpush.msra.mxu2 %v1325_v0 }
 0x294   :  { %579 = vmatpush.msra.mxu2 %v1330_v1 }
 0x296   :  { %580 = vmatpush.msra.mxu2 %v1342_v3 }
 0x298   :  { %581 = vmatpush.msra.mxu2 %v1360_v6 }
 0x29a   :  { %582 = vmatpush.msra.mxu2 %v1373_v8 }
 0x29c   :  { %583 = vmatpush.msra.mxu2 %v1386_v10 }
 0x29e   :  { %584 = vmatpush.msra.mxu2 %v1399_v12 }
 0x2a0   :  { %585 = vmatpush.msra.mxu2 %v1412_v14 }
 0x2a2   :  { %586 = vmatpush.msra.mxu2 %v1425_v16 }
 0x2a4   :  { %587 = vmatpush.msra.mxu2 %v1438_v19 }
 0x2a6   :  { %588 = vmatpush.msra.mxu2 %v1446_v20 }
 0x2a8   :  { %589 = vmatpush.msra.mxu2 %v1454_v21 }
 0x2aa   :  { %590 = vmatpush.msra.mxu2 %v1461_v23 }
 0x314   :  { %v402_v57 = vpop.f32.mrf.mxu2 }
 0x315   :  { %v1288_v58 = vadd.f32 %v1285_v56, %v402_v57 }
 0x317   :  { %406 = vrot.lane.b32.xlu0 %v1288_v58, %s855_s23 }
 0x389   :  { %v407_v22 = vpop.permute.xlu0 %406 }
 0x38a   :  { %v409_v24 = vsel %vm284_vm1, %v1147_v17, %v407_v22  ;;  %v1484_v17 = vld [vmem:[%s1668_s11 + $0x10] sm:$0xff] }
 0x38b   :  { %808 = vmatmul.msk.f32.vlgmr.msra.gmra.mxu3 %vm415_vm3, %v409_v24  ;;  %477 = vmatpush.msra.mxu0 %v1484_v17 }
 0x38c   :  { %547 = vmatpush.msra.mxu3 %v1255_v51  ;;  %591 = vmatpush.msra.mxu2 %v1484_v17 }
 0x38d   :  { %478 = vmatpush.msra.mxu0 %v1496_v26 }
 0x38e   :  { %548 = vmatpush.msra.mxu3 %v1260_v52  ;;  %592 = vmatpush.msra.mxu2 %v1496_v26 }
 0x38f   :  { %479 = vmatpush.msra.mxu0 %v1509_v28 }
 0x390   :  { %549 = vmatpush.msra.mxu3 %v1266_v53  ;;  %593 = vmatpush.msra.mxu2 %v1509_v28 }
 0x391   :  { %630 = vmatpush.msrb.mxu0 %v1186_v36 }
 0x392   :  { %550 = vmatpush.msra.mxu3 %v1272_v54 }
 0x393   :  { %809 = vmatmul.msk.f32.vlgmr.msrb.gmra.mxu3 %vm415_vm3, %v409_v24  ;;  %631 = vmatpush.msrb.mxu0 %v1191_v37 }
 0x394   :  { %551 = vmatpush.msra.mxu3 %v1278_v55 }
 0x395   :  { %632 = vmatpush.msrb.mxu0 %v1197_v38 }
 0x396   :  { %567 = vmatpush.msrb.mxu3 %v1295_v59 }
 0x397   :  { %633 = vmatpush.msrb.mxu0 %v1203_v39  ;;  %v1563_v39 = vperm.slane %v142_v34, 1 }
 0x398   :  { %568 = vmatpush.msrb.mxu3 %v1301_v60 }
 0x399   :  { %634 = vmatpush.msrb.mxu0 %v1209_v40 }
 0x39a   :  { %569 = vmatpush.msrb.mxu3 %v1306_v61 }
 0x39b   :  { %635 = vmatpush.msrb.mxu0 %v1215_v41 }
 0x39c   :  { %570 = vmatpush.msrb.mxu3 %v1312_v62 }
 0x39d   :  { %636 = vmatpush.msrb.mxu0 %v1221_v42 }
 0x39e   :  { %571 = vmatpush.msrb.mxu3 %v1318_v63 }
 0x39f   :  { %637 = vmatpush.msrb.mxu0 %v1235_v48 }
 0x40e   :  { %v436_v36 = vpop.f32.mrf.mxu3 }
 0x40f   :  { %v437_v37 = vadd.f32 %v436_v36, %v1560_v35 }
 0x411   :  { %v459_v38 = vmax.f32 %v437_v37, 0.0 }
 0x413   :  { %480 = vmatmul.f32.vlgmr.msra.gmra.mxu0 %v459_v38 }
 0x414   :  { %692 = vmatpush.msra.mxu0 %v1325_v0 }
 0x416   :  { %v456_v40 = vpop.f32.mrf.mxu3  ;;  %693 = vmatpush.msra.mxu0 %v1330_v1 }
 0x417   :  { %v457_v41 = vadd.f32 %v456_v40, %v1563_v39 }
 0x418   :  { %694 = vmatpush.msra.mxu0 %v1342_v3 }
 0x419   :  { %v460_v42 = vmax.f32 %v457_v41, 0.0 }
 0x41a   :  { %695 = vmatpush.msra.mxu0 %v1360_v6 }
 0x41b   :  { %500 = vmatmul.f32.vlgmr.msra.gmra.mxu1 %v460_v42 }
 0x41c   :  { %712 = vmatpush.msra.mxu1 %v1336_v2  ;;  %696 = vmatpush.msra.mxu0 %v1373_v8 }
 0x41e   :  { %713 = vmatpush.msra.mxu1 %v1348_v4  ;;  %697 = vmatpush.msra.mxu0 %v1386_v10 }
 0x420   :  { %714 = vmatpush.msra.mxu1 %v1354_v5  ;;  %698 = vmatpush.msra.mxu0 %v1399_v12 }
 0x422   :  { %715 = vmatpush.msra.mxu1 %v1367_v7  ;;  %699 = vmatpush.msra.mxu0 %v1412_v14 }
 0x424   :  { %716 = vmatpush.msra.mxu1 %v1380_v9  ;;  %700 = vmatpush.msra.mxu0 %v1425_v16 }
 0x426   :  { %717 = vmatpush.msra.mxu1 %v1393_v11  ;;  %701 = vmatpush.msra.mxu0 %v1438_v19 }
 0x428   :  { %718 = vmatpush.msra.mxu1 %v1406_v13  ;;  %702 = vmatpush.msra.mxu0 %v1446_v20 }
 0x42a   :  { %719 = vmatpush.msra.mxu1 %v1419_v15  ;;  %703 = vmatpush.msra.mxu0 %v1454_v21 }
 0x42c   :  { %720 = vmatpush.msra.mxu1 %v1432_v18  ;;  %704 = vmatpush.msra.mxu0 %v1461_v23 }
 0x42e   :  { %721 = vmatpush.msra.mxu1 %v1489_v25  ;;  %705 = vmatpush.msra.mxu0 %v1484_v17 }
 0x430   :  { %722 = vmatpush.msra.mxu1 %v1501_v27  ;;  %706 = vmatpush.msra.mxu0 %v1496_v26 }
 0x432   :  { %723 = vmatpush.msra.mxu1 %v1514_v29  ;;  %707 = vmatpush.msra.mxu0 %v1509_v28 }
 0x434   :  { %724 = vmatpush.msra.mxu1 %v1522_v30 }
 0x436   :  { %725 = vmatpush.msra.mxu1 %v1530_v31 }
 0x438   :  { %726 = vmatpush.msra.mxu1 %v1537_v32 }
 0x43a   :  { %727 = vmatpush.msra.mxu1 %v1544_v33 }
 0x490   :  { %v481_v44 = vpop.f32.mrf.mxu0 }
 0x491   :  { %v482_v45 = vadd.f32 %v1601_v43, %v481_v44 }
 0x498   :  { %v501_v46 = vpop.f32.mrf.mxu1 }
 0x499   :  { %v502_v48 = vadd.f32 %v501_v46, %v482_v45 }
 0x49b   :  { %v504_v50 = vsel %vm284_vm1, %v502_v48, %v1246_v49  ;;  %v732_v57 = vsub.f32 %v502_v48, %v1228_v47 }
 0x49c   :  { %810 = vmatmul.msk.f32.vlgmr.msrb.gmra.mxu2 %vm381_vm2, %v504_v50 }
 0x49d   :  { %v733_v59 = vmul.f32 %v732_v57, %v732_v57  ;;  %661 = vmatpush.msrb.mxu2 %v1255_v51 }
 0x49f   :  { %v735_v60 = vsel %vm734_vm4, %v733_v59, 0.0  ;;  %662 = vmatpush.msrb.mxu2 %v1260_v52 }
 0x4a0   :  { %736 = vadd.xlane.f32.xlu2 %v735_v60 }
 0x4a1   :  { %663 = vmatpush.msrb.mxu2 %v1266_v53 }
 0x4a3   :  { %664 = vmatpush.msrb.mxu2 %v1272_v54 }
 0x4a5   :  { %665 = vmatpush.msrb.mxu2 %v1278_v55 }
 0x513   :  { %v737_v61 = vpop.xlane.xlu2 %736 }
 0x514   :  { %v738_v62 = vrot.slane %v737_v61, 4 }
 0x516   :  { %v739_v63 = vadd.f32 %v738_v62, %v737_v61 }
 0x518   :  { %v740_v0 = vrot.slane %v739_v63, 2 }
 0x51a   :  { %v741_v1 = vadd.f32 %v740_v0, %v739_v63 }
 0x51c   :  { %v742_v3 = vrot.slane %v741_v1, 1 }
 0x51e   :  { %v743_v6 = vadd.f32 %v742_v3, %v741_v1 }
 0x51f   :  { %v525_v8 = vpop.f32.mrf.mxu2 }
 0x520   :  { %v526_v51 = vadd.f32 %v1285_v56, %v525_v8  ;;  %817 = vpush %v743_v6 }
 0x522   :  { %529 = vrot.lane.b32.xlu1 %v526_v51, %s855_s23 }
 0x551   :  { %s818_s12 = spop %817 }
 0x552   :  { %s745_s16 = smul.f32 0.015625, %s818_s12 }
 0x594   :  { %v530_v52 = vpop.permute.xlu1 %529 }
 0x595   :  { %v532_v53 = vsel %vm284_vm1, %v502_v48, %v530_v52 }
 0x596   :  { %811 = vmatmul.msk.f32.vlgmr.msra.gmra.mxu3 %vm415_vm3, %v532_v53 }
 0x597   :  { %598 = vmatpush.msra.mxu3 %v1336_v2 }
 0x599   :  { %599 = vmatpush.msra.mxu3 %v1348_v4 }
 0x59b   :  { %600 = vmatpush.msra.mxu3 %v1354_v5 }
 0x59d   :  { %601 = vmatpush.msra.mxu3 %v1367_v7 }
 0x59e   :  { %812 = vmatmul.msk.f32.vlgmr.msrb.gmra.mxu3 %vm415_vm3, %v532_v53 }
 0x59f   :  { %602 = vmatpush.msra.mxu3 %v1380_v9 }
 0x5a1   :  { %603 = vmatpush.msra.mxu3 %v1393_v11 }
 0x5a3   :  { %604 = vmatpush.msra.mxu3 %v1406_v13 }
 0x5a5   :  { %605 = vmatpush.msra.mxu3 %v1419_v15 }
 0x5a7   :  { %606 = vmatpush.msra.mxu3 %v1432_v18 }
 0x5a9   :  { %607 = vmatpush.msra.mxu3 %v1489_v25 }
 0x5ab   :  { %608 = vmatpush.msra.mxu3 %v1501_v27 }
 0x5ad   :  { %609 = vmatpush.msra.mxu3 %v1514_v29 }
 0x5af   :  { %610 = vmatpush.msra.mxu3 %v1522_v30 }
 0x5b1   :  { %611 = vmatpush.msra.mxu3 %v1530_v31 }
 0x5b3   :  { %612 = vmatpush.msra.mxu3 %v1537_v32 }
 0x5b5   :  { %613 = vmatpush.msra.mxu3 %v1544_v33 }
 0x619   :  { %v553_v54 = vpop.f32.mrf.mxu3 }
 0x61a   :  { %v554_v55 = vadd.f32 %v553_v54, %v1560_v35 }
 0x61c   :  { %v576_v2 = vmax.f32 %v554_v55, 0.0 }
 0x61e   :  { %594 = vmatmul.f32.vlgmr.msra.gmra.mxu2 %v576_v2 }
 0x621   :  { %v573_v4 = vpop.f32.mrf.mxu3 }
 0x622   :  { %v574_v5 = vadd.f32 %v573_v4, %v1563_v39 }
 0x624   :  { %v577_v7 = vmax.f32 %v574_v5, 0.0 }
 0x626   :  { %614 = vmatmul.f32.vlgmr.msra.gmra.mxu3 %v577_v7 }
 0x6a1   :  { %v595_v9 = vpop.f32.mrf.mxu2 }
 0x6a2   :  { %v596_v10 = vadd.f32 %v1601_v43, %v595_v9 }
 0x6a9   :  { %v615_v11 = vpop.f32.mrf.mxu3 }
 0x6aa   :  { %v616_v12 = vadd.f32 %v615_v11, %v596_v10 }
 0x6ac   :  { %v618_v13 = vsel %vm284_vm1, %v616_v12, %v1246_v49  ;;  %v746_v14 = vsub.f32 %v616_v12, %v1228_v47 }
 0x6ad   :  { %813 = vmatmul.msk.f32.vlgmr.msrb.gmra.mxu0 %vm381_vm2, %v618_v13 }
 0x6ae   :  { %v747_v15 = vmul.f32 %v746_v14, %v746_v14 }
 0x6b0   :  { %v748_v16 = vsel %vm734_vm4, %v747_v15, 0.0 }
 0x6b1   :  { %749 = vadd.xlane.f32.xlu2 %v748_v16 }
 0x724   :  { %v750_v18 = vpop.xlane.xlu2 %749 }
 0x725   :  { %v751_v19 = vrot.slane %v750_v18, 4 }
 0x727   :  { %v752_v20 = vadd.f32 %v751_v19, %v750_v18 }
 0x729   :  { %v753_v21 = vrot.slane %v752_v20, 2 }
 0x72a   :  { %v639_v22 = vpop.f32.mrf.mxu0 }
 0x72b   :  { %v754_v23 = vadd.f32 %v753_v21, %v752_v20  ;;  %v640_v24 = vadd.f32 %v1285_v56, %v639_v22 }
 0x72d   :  { %643 = vrot.lane.b32.xlu1 %v640_v24, %s855_s23  ;;  %v755_v17 = vrot.slane %v754_v23, 1 }
 0x72f   :  { %v756_v49 = vadd.f32 %v755_v17, %v754_v23 }
 0x731   :  { %819 = vpush %v756_v49 }
 0x762   :  { %s820_s23 = spop %819 }
 0x763   :  { %s758_s6 = smul.f32 0.015625, %s820_s23 }
 0x765   :  { %s776_s17 = sadd.f32 %s758_s6, %s745_s16  ;;  %p772_p0 = scmp.le.f32.partialorder %s758_s6, %s745_s16 }
 0x79f   :  { %v644_v25 = vpop.permute.xlu1 %643 }
 0x7a0   :  { %v646_v26 = vsel %vm284_vm1, %v616_v12, %v644_v25 }
 0x7a1   :  { %814 = vmatmul.msk.f32.vlgmr.msrb.gmra.mxu2 %vm415_vm3, %v646_v26  ;;  %815 = vmatmul.msk.f32.vlgmr.msrb.gmra.mxu1 %vm415_vm3, %v646_v26 }
 0x81e   :  { %v687_v27 = vpop.f32.mrf.mxu1 }
 0x81f   :  { %v688_v28 = vadd.f32 %v687_v27, %v1563_v39 }
 0x821   :  { %v691_v29 = vmax.f32 %v688_v28, 0.0 }
 0x823   :  { %728 = vmatmul.f32.vlgmr.msra.gmra.mxu1 %v691_v29 }
 0x824   :  { %v667_v30 = vpop.f32.mrf.mxu2 }
 0x825   :  { %v668_v56 = vadd.f32 %v667_v30, %v1560_v35 }
 0x827   :  { %v690_v31 = vmax.f32 %v668_v56, 0.0 }
 0x829   :  { %708 = vmatmul.f32.vlgmr.msra.gmra.mxu0 %v690_v31 }
 0x8a0   :  { %v729_v34 = vpop.f32.mrf.mxu1 }
 0x8a6   :  { %v709_v32 = vpop.f32.mrf.mxu0 }
 0x8a7   :  { %v710_v33 = vadd.f32 %v1601_v43, %v709_v32 }
 0x8a9   :  { %v730_v36 = vadd.f32 %v729_v34, %v710_v33 }
 0x8ab   :  { %v759_v37 = vsub.f32 %v730_v36, %v1228_v47 }
 0x8ad   :  { %v760_v38 = vmul.f32 %v759_v37, %v759_v37 }
 0x8af   :  { %v761_v40 = vsel %vm734_vm4, %v760_v38, 0.0 }
 0x8b0   :  { %762 = vadd.xlane.f32.xlu0 %v761_v40 }
 0x923   :  { %v763_v41 = vpop.xlane.xlu0 %762 }
 0x924   :  { %v764_v39 = vrot.slane %v763_v41, 4 }
 0x926   :  { %v765_v42 = vadd.f32 %v764_v39, %v763_v41 }
 0x928   :  { %v766_v44 = vrot.slane %v765_v42, 2 }
 0x92a   :  { %v767_v45 = vadd.f32 %v766_v44, %v765_v42 }
 0x92c   :  { %v768_v46 = vrot.slane %v767_v45, 1 }
 0x92e   :  { %v769_v35 = vadd.f32 %v768_v46, %v767_v45 }
 0x930   :  { %821 = vpush %v769_v35 }
 0x961   :  { %s822_s3 = spop %821 }
 0x962   :  { %s771_s0 = smul.f32 0.015625, %s822_s3 }
 0x964   :  { %p773_p1 = scmp.le.f32.partialorder %s771_s0, %s758_s6  ;;  %s777_s18 = sadd.f32 %s776_s17, %s771_s0 }
 0x966   :  { %p774_p2 = pnand %p773_p1, %p772_p0  ;;  %p778_p4 = scmp.lt.f32.partialorder %s777_s18, inf }
 0x968   :  { %p775_p3 = pneg %p774_p2 }
 0x96a   :  { %p779_p5 = pnand %p778_p4, %p775_p3 }
 0x96c   :  { %s816_s21 = scalar_select %p779_p5, 0, 1 }
 0x96e   :  { %v782_v47 = vstv %s816_s21 }
 0x96f   :  { %vm783_vm6 = vcmp.eq.s32.totalorder %v782_v47, 1 }
 0x970   :  { %v784_v43 = vsel %vm783_vm6, %v1288_v58, 0.0 }
 0x971   :  { %786 = vst.msk [vmem:[#allocation2] sm:$0x3] %vm785_vm5, %v784_v43 }
 0x972   :  { %797 = dma.vmem_to_hbm [thread:$0]  %s793_s2, 32, %s795_s20, [#allocation3]  }
 0x973   :  { %853 = dma.done.wait [#allocation3], 32  }
 0x974   :  { %854 = vsyncadd [#allocation3], 4294967264 }
 0x975   :  { %802 = vsyncpa [#allocation3], 1 }

</bundles_post_ra>
